<compile_context>
chip_gen: v5e
topology: v5e:2x2
jax: 0.10.0
libtpu: 0.0.40
codegen_flags: <defaults>
</compile_context>

<pallas_src>
import itertools
import numpy as np

import jax
import jax.numpy as jnp
from jax.experimental import pallas as pl
from jax.experimental.pallas import tpu as pltpu

try:  # use scipy if available, fall back to exact brute force for tiny demos
    from scipy.optimize import linear_sum_assignment as _scipy_lsa
except Exception:  # pragma: no cover
    _scipy_lsa = None

# Constants baked into the reference module's forward pass.
_BETA_1, _BETA_2 = 1.2, 1.0
_ALPHA_H, _ALPHA_O, _ALPHA_R = 1.0, 1.0, 2.0
_EPS = 1e-7
_QF = 9          # per-head box features: w_bbox*(cx,cy,w,h), x0,y0,x1,y1, area


def _round_up(x, m):
    return ((x + m - 1) // m) * m


def _tile_caps():
    """Generation-aware (TBQ_max, TT_max, vmem_limit_bytes)."""
    vmem = 0
    try:
        vmem = int(pltpu.get_tpu_info().vmem_capacity_bytes)
    except Exception:
        vmem = 0
    if vmem >= (128 << 20):           # v5e / v6e: 128 MiB VMEM per TensorCore
        return 512, 2048, 96 << 20
    # v7x (64 MiB per TC) or unknown backend: stay conservative.
    return 256, 1024, 48 << 20


# --------------------------------------------------------------------------- #
# Pallas kernel: one [TBQ, TT] tile of the matching-cost matrix per grid step
# --------------------------------------------------------------------------- #
def _make_cost_kernel(w_giou):
    w_giou = float(w_giou)

    def head_cost(qb, tb, off):
        # qb: [TBQ, 2*_QF] per-query features, tb: [2*_QF, TT] per-target.
        def q(k):
            return qb[:, off + k:off + k + 1]            # [TBQ, 1]

        def t(k):
            return tb[off + k:off + k + 1, :]            # [1, TT]

        # L1 on (pre-scaled) cxcywh — already carries the w_bbox weight.
        l1 = (jnp.abs(q(0) - t(0)) + jnp.abs(q(1) - t(1))
              + jnp.abs(q(2) - t(2)) + jnp.abs(q(3) - t(3)))

        # GIoU from precomputed corners (4..7 = x0,y0,x1,y1) and area (8).
        iw = jnp.maximum(jnp.minimum(q(6), t(6)) - jnp.maximum(q(4), t(4)), 0.0)
        ih = jnp.maximum(jnp.minimum(q(7), t(7)) - jnp.maximum(q(5), t(5)), 0.0)
        inter = iw * ih
        union = q(8) + t(8) - inter
        iou = inter * pl.reciprocal(jnp.maximum(union, _EPS), approx=True)
        cw = jnp.maximum(q(6), t(6)) - jnp.minimum(q(4), t(4))
        ch = jnp.maximum(q(7), t(7)) - jnp.minimum(q(5), t(5))
        carea = cw * ch
        giou = iou - (carea - union) * pl.reciprocal(
            jnp.maximum(carea, _EPS), approx=True)
        return l1 - w_giou * giou

    def kernel(p_ref, qb_ref, w_oh_ref, tb_ref, c_ref):
        # Fused weighted class cost on the MXU (bf16 operands, f32 accumulate).
        acc = jnp.dot(p_ref[...].astype(jnp.bfloat16), w_oh_ref[...],
                      preferred_element_type=jnp.float32)      # [TBQ, TT]
        qb = qb_ref[...]
        tb = tb_ref[...]
        # Human head, then object head, folded into the accumulator in place.
        acc = acc + head_cost(qb, tb, 0)
        acc = acc + head_cost(qb, tb, _QF)
        c_ref[...] = acc

    return kernel


# --------------------------------------------------------------------------- #
# Wrapper: layout plumbing + pallas_call
# --------------------------------------------------------------------------- #
def _box_features(boxes_cxcywh, l1_scale):
    """[N,4] cxcywh -> [N, _QF] = [w*cx, w*cy, w*w, w*h, x0, y0, x1, y1, area]."""
    cx = boxes_cxcywh[:, 0]
    cy = boxes_cxcywh[:, 1]
    w = boxes_cxcywh[:, 2]
    h = boxes_cxcywh[:, 3]
    x0, y0 = cx - 0.5 * w, cy - 0.5 * h
    x1, y1 = cx + 0.5 * w, cy + 0.5 * h
    area = (x1 - x0) * (y1 - y0)
    return jnp.stack([l1_scale * cx, l1_scale * cy, l1_scale * w, l1_scale * h,
                      x0, y0, x1, y1, area], axis=-1).astype(jnp.float32)


def compute_cost_matrix(outputs, targets,
                        cost_class=1.0, cost_bbox=1.0, cost_giou=1.0):
    """Returns the matching cost matrix C of shape [bs, num_queries, T_total]."""
    bs, num_queries = outputs['action_pred_logits'].shape[:2]
    bq = bs * num_queries

    h_logits = outputs['human_pred_logits'].reshape(bq, -1).astype(jnp.float32)
    o_logits = outputs['object_pred_logits'].reshape(bq, -1).astype(jnp.float32)
    a_logits = outputs['action_pred_logits'].reshape(bq, -1).astype(jnp.float32)
    h_box = outputs['human_pred_boxes'].reshape(bq, 4).astype(jnp.float32)
    o_box = outputs['object_pred_boxes'].reshape(bq, 4).astype(jnp.float32)

    n_h, n_o, n_a = h_logits.shape[-1], o_logits.shape[-1], a_logits.shape[-1]
    assert n_h > 0 and n_o > 0 and n_a > 0, "empty class segment"
    c_total = n_h + n_o + n_a

    # Softmax hoisted out of the kernel: computed once per query with XLA.
    probs = jnp.concatenate([jax.nn.softmax(h_logits, axis=-1),
                             jax.nn.softmax(o_logits, axis=-1),
                             jax.nn.softmax(a_logits, axis=-1)], axis=-1)  # [BQ,C]

    h_ids = jnp.concatenate([t['human_labels'] for t in targets])
    o_ids = jnp.concatenate([t['object_labels'] for t in targets])
    a_ids = jnp.concatenate([t['action_labels'] for t in targets])
    h_tbox = jnp.concatenate([t['human_boxes'] for t in targets]).astype(jnp.float32)
    o_tbox = jnp.concatenate([t['object_boxes'] for t in targets]).astype(jnp.float32)
    t_total = int(h_tbox.shape[0])

    # Weighted, stacked one-hot selection matrix [C_total, T]: folds
    # -beta_1 * cost_class * alpha_head / sum(alpha) into the gather matmul.
    alpha_sum = _ALPHA_H + _ALPHA_O + _ALPHA_R
    w_h = -_BETA_1 * cost_class * _ALPHA_H / alpha_sum
    w_o = -_BETA_1 * cost_class * _ALPHA_O / alpha_sum
    w_a = -_BETA_1 * cost_class * _ALPHA_R / alpha_sum
    w_oh = jnp.concatenate([
        w_h * jax.nn.one_hot(h_ids, n_h, dtype=jnp.float32).T,
        w_o * jax.nn.one_hot(o_ids, n_o, dtype=jnp.float32).T,
        w_a * jax.nn.one_hot(a_ids, n_a, dtype=jnp.float32).T,
    ], axis=0)                                                        # [C, T]

    # Folded box weights: beta_2/2 * cost_bbox and beta_2/2 * cost_giou.
    w_bbox = _BETA_2 * cost_bbox / 2.0
    w_giou = _BETA_2 * cost_giou / 2.0

    # ---- generation-aware tiling / padding -----------------------------------
    tbq_max, tt_max, vmem_limit = _tile_caps()

    t128 = _round_up(max(t_total, 1), 128)
    tt = min(t128, tt_max)
    t_pad = _round_up(t128, tt)

    bq8 = _round_up(bq, 8)
    tbq = min(bq8, tbq_max)
    bq_pad = _round_up(bq8, tbq)
    n_i, n_j = bq_pad // tbq, t_pad // tt

    # v7x has 2 TensorCores: guarantee >= 2 blocks along a 'parallel' axis.
    if n_i * n_j < 2 and bq8 >= 16:
        tbq = _round_up(bq8 // 2, 8)
        bq_pad = _round_up(bq8, tbq)
        n_i = bq_pad // tbq

    c_cls = _round_up(c_total, 128)   # lane/sublane-aligned class dim (zero pad)

    probs_p = jnp.pad(probs, ((0, bq_pad - bq), (0, c_cls - c_total)))
    w_oh_p = jnp.pad(w_oh, ((0, c_cls - c_total),
                            (0, t_pad - t_total))).astype(jnp.bfloat16)

    # Per-query box features (corners/areas precomputed, L1 coords pre-scaled).
    qfeat = jnp.concatenate([_box_features(h_box, w_bbox),
                             _box_features(o_box, w_bbox)], axis=-1)  # [BQ, 18]
    qfeat_p = jnp.pad(qfeat, ((0, bq_pad - bq), (0, 0)))

    pad_t = t_pad - t_total
    if pad_t > 0:
        # Safe dummy target box (0.5, 0.5, 1, 1) for padded columns (sliced off
        # on the host, but keeps the math finite).
        dummy = jnp.broadcast_to(
            jnp.array([[0.5, 0.5, 1.0, 1.0]], jnp.float32), (pad_t, 4))
        h_tb_p = jnp.concatenate([h_tbox, dummy], axis=0)
        o_tb_p = jnp.concatenate([o_tbox, dummy], axis=0)
    else:
        h_tb_p, o_tb_p = h_tbox, o_tbox
    tfeat = jnp.concatenate([_box_features(h_tb_p, w_bbox),
                             _box_features(o_tb_p, w_bbox)], axis=-1).T  # [18,T]

    kernel = _make_cost_kernel(w_giou)

    grid_spec = pltpu.PrefetchScalarGridSpec(
        num_scalar_prefetch=0,
        grid=(n_i, n_j),
        in_specs=[
            pl.BlockSpec((tbq, c_cls), lambda i, j: (i, 0)),
            pl.BlockSpec((tbq, 2 * _QF), lambda i, j: (i, 0)),
            pl.BlockSpec((c_cls, tt), lambda i, j: (0, j)),
            pl.BlockSpec((2 * _QF, tt), lambda i, j: (0, j)),
        ],
        out_specs=pl.BlockSpec((tbq, tt), lambda i, j: (i, j)),
    )

    cost_estimate = pl.CostEstimate(
        flops=int(2 * bq_pad * c_cls * t_pad + 80 * bq_pad * t_pad),
        transcendentals=int(4 * bq_pad * t_pad),
        bytes_accessed=int(4 * bq_pad * (c_cls + 2 * _QF)
                           + 2 * c_cls * t_pad + 4 * 2 * _QF * t_pad
                           + 4 * bq_pad * t_pad),
    )

    c_full = pl.pallas_call(
        kernel,
        out_shape=jax.ShapeDtypeStruct((bq_pad, t_pad), jnp.float32),
        grid_spec=grid_spec,
        compiler_params=pltpu.CompilerParams(
            dimension_semantics=("parallel", "parallel"),
            vmem_limit_bytes=vmem_limit),
        cost_estimate=cost_estimate,
    )(probs_p, qfeat_p, w_oh_p, tfeat)

    return c_full[:bq, :t_total].reshape(bs, num_queries, t_total)


# --------------------------------------------------------------------------- #
# Host-side assignment (no Pallas equivalent)
# --------------------------------------------------------------------------- #
# TODO(synk): Hungarian linear_sum_assignment is a sequential combinatorial
# algorithm with no clean Pallas equivalent; it runs on the host (scipy if
# available, exact brute force otherwise — fine for the small demo sizes).
def _linear_sum_assignment_exact(cost):
    nq, nt = cost.shape
    assert nt <= nq, "expected num_queries >= num_targets"
    best_rows, best_cost = None, np.inf
    for perm in itertools.permutations(range(nq), nt):
        s = sum(cost[perm[j], j] for j in range(nt))
        if s < best_cost:
            best_cost, best_rows = s, perm
    rows = np.asarray(best_rows, dtype=np.int64)
    cols = np.arange(nt, dtype=np.int64)
    order = np.argsort(rows)
    return rows[order], cols[order]


def _linear_sum_assignment(cost):
    if _scipy_lsa is not None:
        r, c = _scipy_lsa(cost)
        return np.asarray(r), np.asarray(c)
    return _linear_sum_assignment_exact(cost)


def hungarian_matcher(outputs, targets,
                      cost_class=1.0, cost_bbox=1.0, cost_giou=1.0):
    C = compute_cost_matrix(outputs, targets, cost_class, cost_bbox, cost_giou)
    C = jax.block_until_ready(C)
    C_np = np.asarray(C)

    sizes = [len(t['human_boxes']) for t in targets]
    results = []
    col_off = 0
    for b, sz in enumerate(sizes):
        sub = C_np[b, :, col_off:col_off + sz]
        i, j = _linear_sum_assignment(sub)
        results.append((jnp.asarray(i, dtype=jnp.int32),
                        jnp.asarray(j, dtype=jnp.int32)))
        col_off += sz
    return results, C


# --------------------------------------------------------------------------- #
# Pure-numpy reference (mirrors the PyTorch forward) for a sanity check
# --------------------------------------------------------------------------- #
def _reference_cost_matrix_np(outputs, targets,
                              cost_class=1.0, cost_bbox=1.0, cost_giou=1.0):
    def softmax(x):
        x = x - x.max(-1, keepdims=True)
        e = np.exp(x)
        return e / e.sum(-1, keepdims=True)

    def to_xyxy(b):
        cx, cy, w, h = b[..., 0], b[..., 1], b[..., 2], b[..., 3]
        return np.stack([cx - 0.5 * w, cy - 0.5 * h, cx + 0.5 * w, cy + 0.5 * h], -1)

    def giou(a, b):
        area_a = (a[:, 2] - a[:, 0]) * (a[:, 3] - a[:, 1])
        area_b = (b[:, 2] - b[:, 0]) * (b[:, 3] - b[:, 1])
        lt = np.maximum(a[:, None, :2], b[None, :, :2])
        rb = np.minimum(a[:, None, 2:], b[None, :, 2:])
        wh = np.clip(rb - lt, 0, None)
        inter = wh[..., 0] * wh[..., 1]
        union = area_a[:, None] + area_b[None, :] - inter
        iou = inter / union
        lt2 = np.minimum(a[:, None, :2], b[None, :, :2])
        rb2 = np.maximum(a[:, None, 2:], b[None, :, 2:])
        wh2 = np.clip(rb2 - lt2, 0, None)
        carea = wh2[..., 0] * wh2[..., 1]
        return iou - (carea - union) / carea

    bs, nq = outputs['action_pred_logits'].shape[:2]
    hp = softmax(np.asarray(outputs['human_pred_logits'], np.float64).reshape(bs * nq, -1))
    op = softmax(np.asarray(outputs['object_pred_logits'], np.float64).reshape(bs * nq, -1))
    ap = softmax(np.asarray(outputs['action_pred_logits'], np.float64).reshape(bs * nq, -1))
    hb = np.asarray(outputs['human_pred_boxes'], np.float64).reshape(bs * nq, 4)
    ob = np.asarray(outputs['object_pred_boxes'], np.float64).reshape(bs * nq, 4)
    h_ids = np.concatenate([np.asarray(t['human_labels']) for t in targets])
    o_ids = np.concatenate([np.asarray(t['object_labels']) for t in targets])
    a_ids = np.concatenate([np.asarray(t['action_labels']) for t in targets])
    h_tb = np.concatenate([np.asarray(t['human_boxes'], np.float64) for t in targets])
    o_tb = np.concatenate([np.asarray(t['object_boxes'], np.float64) for t in targets])

    hcc, occ, acc = -hp[:, h_ids], -op[:, o_ids], -ap[:, a_ids]
    hcb = np.abs(hb[:, None, :] - h_tb[None, :, :]).sum(-1)
    ocb = np.abs(ob[:, None, :] - o_tb[None, :, :]).sum(-1)
    hcg = -giou(to_xyxy(hb), to_xyxy(h_tb))
    ocg = -giou(to_xyxy(ob), to_xyxy(o_tb))

    l_cls = (_ALPHA_H * cost_class * hcc + _ALPHA_O * cost_class * occ
             + _ALPHA_R * cost_class * acc) / (_ALPHA_H + _ALPHA_O + _ALPHA_R)
    l_box = (cost_bbox * hcb + cost_giou * hcg
             + cost_bbox * ocb + cost_giou * ocg) / 2.0
    return (_BETA_1 * l_cls + _BETA_2 * l_box).reshape(bs, nq, -1)


# --------------------------------------------------------------------------- #
# Demo
# --------------------------------------------------------------------------- #
if __name__ == "__main__":
    key = jax.random.PRNGKey(0)
    bs, num_queries = 2, 8
    n_human_cls, n_object_cls, n_action_cls = 3, 12, 10

    ks = jax.random.split(key, 12)

    def rand_boxes(k, n):
        cxcy = jax.random.uniform(k, (n, 2), minval=0.2, maxval=0.8)
        k2 = jax.random.fold_in(k, 1)
        wh = jax.random.uniform(k2, (n, 2), minval=0.05, maxval=0.3)
        return jnp.concatenate([cxcy, wh], axis=-1).astype(jnp.float32)

    outputs = {
        'human_pred_logits': jax.random.normal(ks[0], (bs, num_queries, n_human_cls), jnp.float32),
        'object_pred_logits': jax.random.normal(ks[1], (bs, num_queries, n_object_cls), jnp.float32),
        'action_pred_logits': jax.random.normal(ks[2], (bs, num_queries, n_action_cls), jnp.float32),
        'human_pred_boxes': rand_boxes(ks[3], bs * num_queries).reshape(bs, num_queries, 4),
        'object_pred_boxes': rand_boxes(ks[4], bs * num_queries).reshape(bs, num_queries, 4),
    }

    sizes = [3, 2]  # number of GT interactions per batch element
    targets = []
    for b, sz in enumerate(sizes):
        kb = jax.random.fold_in(ks[5], b)
        k1, k2, k3, k4, k5 = jax.random.split(kb, 5)
        targets.append({
            'human_labels': jax.random.randint(k1, (sz,), 0, n_human_cls),
            'object_labels': jax.random.randint(k2, (sz,), 0, n_object_cls),
            'action_labels': jax.random.randint(k3, (sz,), 0, n_action_cls),
            'human_boxes': rand_boxes(k4, sz),
            'object_boxes': rand_boxes(k5, sz),
        })

    indices, C = hungarian_matcher(outputs, targets)
    jax.block_until_ready(C)
    for i, j in indices:
        jax.block_until_ready(i)
        jax.block_until_ready(j)

    assert C.shape == (bs, num_queries, sum(sizes))
    assert all(len(i) == len(j) == min(num_queries, sz)
               for (i, j), sz in zip(indices, sizes))

    C_ref = _reference_cost_matrix_np(outputs, targets)
    assert np.allclose(np.asarray(C), C_ref, rtol=1e-2, atol=1e-2), \
        "cost matrix mismatch vs. reference"

    print("KERNEL_OK")
</pallas_src>

<mosaic_0001>
module attributes {stable_mosaic.version = 11 : i64} {
  func.func @kernel(%arg0: i32, %arg1: i32, %arg2: memref<8x128xf32, #tpu.memory_space<vmem>>, %arg3: memref<8x18xf32, #tpu.memory_space<vmem>>, %arg4: memref<128x128xbf16, #tpu.memory_space<vmem>>, %arg5: memref<18x128xf32, #tpu.memory_space<vmem>>, %arg6: memref<8x128xf32, #tpu.memory_space<vmem>>) attributes {dimension_semantics = [#tpu.dimension_semantics<parallel>, #tpu.dimension_semantics<parallel>], iteration_bounds = array<i64: 2, 1>, scalar_prefetch = 0 : i64, scratch_operands = 0 : i64, tpu.core_type = #tpu.core_type<tc>, window_params = [{transform_indices = @transform_0, window_bounds = array<i64: 8, 128>}, {transform_indices = @transform_1, window_bounds = array<i64: 8, 18>}, {transform_indices = @transform_2, window_bounds = array<i64: 128, 128>}, {transform_indices = @transform_3, window_bounds = array<i64: 18, 128>}, {transform_indices = @transform_4, window_bounds = array<i64: 8, 128>}]} {
    %c0 = arith.constant 0 : index
    %c0_0 = arith.constant 0 : index
    %0 = vector.load %arg2[%c0, %c0_0] : memref<8x128xf32, #tpu.memory_space<vmem>>, vector<8x128xf32>
    %1 = arith.truncf %0 : vector<8x128xf32> to vector<8x128xbf16>
    %c0_1 = arith.constant 0 : index
    %c0_2 = arith.constant 0 : index
    %2 = vector.load %arg4[%c0_1, %c0_2] : memref<128x128xbf16, #tpu.memory_space<vmem>>, vector<128x128xbf16>
    %cst = arith.constant dense<0.000000e+00> : vector<8x128xf32>
    %3 = tpu.matmul %1, %2, %cst {dimension_numbers = #tpu.dot_dimension_numbers<[1], [0], [0], [1], [0, 0, 1, 1], [], []>} : vector<8x128xbf16>, vector<128x128xbf16>, vector<8x128xf32> -> vector<8x128xf32>
    %c0_3 = arith.constant 0 : index
    %c0_4 = arith.constant 0 : index
    %4 = vector.load %arg3[%c0_3, %c0_4] : memref<8x18xf32, #tpu.memory_space<vmem>>, vector<8x18xf32>
    %c0_5 = arith.constant 0 : index
    %c0_6 = arith.constant 0 : index
    %5 = vector.load %arg5[%c0_5, %c0_6] : memref<18x128xf32, #tpu.memory_space<vmem>>, vector<18x128xf32>
    %6 = vector.extract_strided_slice %4 {offsets = [0, 0], sizes = [8, 1], strides = [1, 1]} : vector<8x18xf32> to vector<8x1xf32>
    %7 = vector.extract_strided_slice %5 {offsets = [0, 0], sizes = [1, 128], strides = [1, 1]} : vector<18x128xf32> to vector<1x128xf32>
    %8 = vector.broadcast %6 : vector<8x1xf32> to vector<8x128xf32>
    %9 = vector.broadcast %7 : vector<1x128xf32> to vector<8x128xf32>
    %10 = arith.subf %8, %9 : vector<8x128xf32>
    %11 = math.absf %10 : vector<8x128xf32>
    %12 = vector.extract_strided_slice %4 {offsets = [0, 1], sizes = [8, 1], strides = [1, 1]} : vector<8x18xf32> to vector<8x1xf32>
    %13 = vector.extract_strided_slice %5 {offsets = [1, 0], sizes = [1, 128], strides = [1, 1]} : vector<18x128xf32> to vector<1x128xf32>
    %14 = vector.broadcast %12 : vector<8x1xf32> to vector<8x128xf32>
    %15 = vector.broadcast %13 : vector<1x128xf32> to vector<8x128xf32>
    %16 = arith.subf %14, %15 : vector<8x128xf32>
    %17 = math.absf %16 : vector<8x128xf32>
    %18 = arith.addf %11, %17 : vector<8x128xf32>
    %19 = vector.extract_strided_slice %4 {offsets = [0, 2], sizes = [8, 1], strides = [1, 1]} : vector<8x18xf32> to vector<8x1xf32>
    %20 = vector.extract_strided_slice %5 {offsets = [2, 0], sizes = [1, 128], strides = [1, 1]} : vector<18x128xf32> to vector<1x128xf32>
    %21 = vector.broadcast %19 : vector<8x1xf32> to vector<8x128xf32>
    %22 = vector.broadcast %20 : vector<1x128xf32> to vector<8x128xf32>
    %23 = arith.subf %21, %22 : vector<8x128xf32>
    %24 = math.absf %23 : vector<8x128xf32>
    %25 = arith.addf %18, %24 : vector<8x128xf32>
    %26 = vector.extract_strided_slice %4 {offsets = [0, 3], sizes = [8, 1], strides = [1, 1]} : vector<8x18xf32> to vector<8x1xf32>
    %27 = vector.extract_strided_slice %5 {offsets = [3, 0], sizes = [1, 128], strides = [1, 1]} : vector<18x128xf32> to vector<1x128xf32>
    %28 = vector.broadcast %26 : vector<8x1xf32> to vector<8x128xf32>
    %29 = vector.broadcast %27 : vector<1x128xf32> to vector<8x128xf32>
    %30 = arith.subf %28, %29 : vector<8x128xf32>
    %31 = math.absf %30 : vector<8x128xf32>
    %32 = arith.addf %25, %31 : vector<8x128xf32>
    %33 = vector.extract_strided_slice %4 {offsets = [0, 6], sizes = [8, 1], strides = [1, 1]} : vector<8x18xf32> to vector<8x1xf32>
    %34 = vector.extract_strided_slice %5 {offsets = [6, 0], sizes = [1, 128], strides = [1, 1]} : vector<18x128xf32> to vector<1x128xf32>
    %35 = vector.broadcast %33 : vector<8x1xf32> to vector<8x128xf32>
    %36 = vector.broadcast %34 : vector<1x128xf32> to vector<8x128xf32>
    %37 = arith.minimumf %35, %36 : vector<8x128xf32>
    %38 = vector.extract_strided_slice %4 {offsets = [0, 4], sizes = [8, 1], strides = [1, 1]} : vector<8x18xf32> to vector<8x1xf32>
    %39 = vector.extract_strided_slice %5 {offsets = [4, 0], sizes = [1, 128], strides = [1, 1]} : vector<18x128xf32> to vector<1x128xf32>
    %40 = vector.broadcast %38 : vector<8x1xf32> to vector<8x128xf32>
    %41 = vector.broadcast %39 : vector<1x128xf32> to vector<8x128xf32>
    %42 = arith.maximumf %40, %41 : vector<8x128xf32>
    %43 = arith.subf %37, %42 : vector<8x128xf32>
    %cst_7 = arith.constant 0.000000e+00 : f32
    %44 = vector.broadcast %cst_7 : f32 to vector<8x128xf32>
    %45 = arith.maximumf %43, %44 : vector<8x128xf32>
    %46 = vector.extract_strided_slice %4 {offsets = [0, 7], sizes = [8, 1], strides = [1, 1]} : vector<8x18xf32> to vector<8x1xf32>
    %47 = vector.extract_strided_slice %5 {offsets = [7, 0], sizes = [1, 128], strides = [1, 1]} : vector<18x128xf32> to vector<1x128xf32>
    %48 = vector.broadcast %46 : vector<8x1xf32> to vector<8x128xf32>
    %49 = vector.broadcast %47 : vector<1x128xf32> to vector<8x128xf32>
    %50 = arith.minimumf %48, %49 : vector<8x128xf32>
    %51 = vector.extract_strided_slice %4 {offsets = [0, 5], sizes = [8, 1], strides = [1, 1]} : vector<8x18xf32> to vector<8x1xf32>
    %52 = vector.extract_strided_slice %5 {offsets = [5, 0], sizes = [1, 128], strides = [1, 1]} : vector<18x128xf32> to vector<1x128xf32>
    %53 = vector.broadcast %51 : vector<8x1xf32> to vector<8x128xf32>
    %54 = vector.broadcast %52 : vector<1x128xf32> to vector<8x128xf32>
    %55 = arith.maximumf %53, %54 : vector<8x128xf32>
    %56 = arith.subf %50, %55 : vector<8x128xf32>
    %cst_8 = arith.constant 0.000000e+00 : f32
    %57 = vector.broadcast %cst_8 : f32 to vector<8x128xf32>
    %58 = arith.maximumf %56, %57 : vector<8x128xf32>
    %59 = arith.mulf %45, %58 : vector<8x128xf32>
    %60 = vector.extract_strided_slice %4 {offsets = [0, 8], sizes = [8, 1], strides = [1, 1]} : vector<8x18xf32> to vector<8x1xf32>
    %61 = vector.extract_strided_slice %5 {offsets = [8, 0], sizes = [1, 128], strides = [1, 1]} : vector<18x128xf32> to vector<1x128xf32>
    %62 = vector.broadcast %60 : vector<8x1xf32> to vector<8x128xf32>
    %63 = vector.broadcast %61 : vector<1x128xf32> to vector<8x128xf32>
    %64 = arith.addf %62, %63 : vector<8x128xf32>
    %65 = arith.subf %64, %59 : vector<8x128xf32>
    %cst_9 = arith.constant 1.000000e-07 : f32
    %66 = vector.broadcast %cst_9 : f32 to vector<8x128xf32>
    %67 = arith.maximumf %65, %66 : vector<8x128xf32>
    %68 = tpu.reciprocal %67 {approx = true} : vector<8x128xf32> -> vector<8x128xf32>
    %69 = arith.mulf %59, %68 : vector<8x128xf32>
    %70 = vector.extract_strided_slice %4 {offsets = [0, 6], sizes = [8, 1], strides = [1, 1]} : vector<8x18xf32> to vector<8x1xf32>
    %71 = vector.extract_strided_slice %5 {offsets = [6, 0], sizes = [1, 128], strides = [1, 1]} : vector<18x128xf32> to vector<1x128xf32>
    %72 = vector.broadcast %70 : vector<8x1xf32> to vector<8x128xf32>
    %73 = vector.broadcast %71 : vector<1x128xf32> to vector<8x128xf32>
    %74 = arith.maximumf %72, %73 : vector<8x128xf32>
    %75 = vector.extract_strided_slice %4 {offsets = [0, 4], sizes = [8, 1], strides = [1, 1]} : vector<8x18xf32> to vector<8x1xf32>
    %76 = vector.extract_strided_slice %5 {offsets = [4, 0], sizes = [1, 128], strides = [1, 1]} : vector<18x128xf32> to vector<1x128xf32>
    %77 = vector.broadcast %75 : vector<8x1xf32> to vector<8x128xf32>
    %78 = vector.broadcast %76 : vector<1x128xf32> to vector<8x128xf32>
    %79 = arith.minimumf %77, %78 : vector<8x128xf32>
    %80 = arith.subf %74, %79 : vector<8x128xf32>
    %81 = vector.extract_strided_slice %4 {offsets = [0, 7], sizes = [8, 1], strides = [1, 1]} : vector<8x18xf32> to vector<8x1xf32>
    %82 = vector.extract_strided_slice %5 {offsets = [7, 0], sizes = [1, 128], strides = [1, 1]} : vector<18x128xf32> to vector<1x128xf32>
    %83 = vector.broadcast %81 : vector<8x1xf32> to vector<8x128xf32>
    %84 = vector.broadcast %82 : vector<1x128xf32> to vector<8x128xf32>
    %85 = arith.maximumf %83, %84 : vector<8x128xf32>
    %86 = vector.extract_strided_slice %4 {offsets = [0, 5], sizes = [8, 1], strides = [1, 1]} : vector<8x18xf32> to vector<8x1xf32>
    %87 = vector.extract_strided_slice %5 {offsets = [5, 0], sizes = [1, 128], strides = [1, 1]} : vector<18x128xf32> to vector<1x128xf32>
    %88 = vector.broadcast %86 : vector<8x1xf32> to vector<8x128xf32>
    %89 = vector.broadcast %87 : vector<1x128xf32> to vector<8x128xf32>
    %90 = arith.minimumf %88, %89 : vector<8x128xf32>
    %91 = arith.subf %85, %90 : vector<8x128xf32>
    %92 = arith.mulf %80, %91 : vector<8x128xf32>
    %93 = arith.subf %92, %65 : vector<8x128xf32>
    %cst_10 = arith.constant 1.000000e-07 : f32
    %94 = vector.broadcast %cst_10 : f32 to vector<8x128xf32>
    %95 = arith.maximumf %92, %94 : vector<8x128xf32>
    %96 = tpu.reciprocal %95 {approx = true} : vector<8x128xf32> -> vector<8x128xf32>
    %97 = arith.mulf %93, %96 : vector<8x128xf32>
    %98 = arith.subf %69, %97 : vector<8x128xf32>
    %cst_11 = arith.constant 5.000000e-01 : f32
    %99 = vector.broadcast %cst_11 : f32 to vector<8x128xf32>
    %100 = arith.mulf %99, %98 : vector<8x128xf32>
    %101 = arith.subf %32, %100 : vector<8x128xf32>
    %102 = arith.addf %3, %101 : vector<8x128xf32>
    %103 = vector.extract_strided_slice %4 {offsets = [0, 9], sizes = [8, 1], strides = [1, 1]} : vector<8x18xf32> to vector<8x1xf32>
    %104 = vector.extract_strided_slice %5 {offsets = [9, 0], sizes = [1, 128], strides = [1, 1]} : vector<18x128xf32> to vector<1x128xf32>
    %105 = vector.broadcast %103 : vector<8x1xf32> to vector<8x128xf32>
    %106 = vector.broadcast %104 : vector<1x128xf32> to vector<8x128xf32>
    %107 = arith.subf %105, %106 : vector<8x128xf32>
    %108 = math.absf %107 : vector<8x128xf32>
    %109 = vector.extract_strided_slice %4 {offsets = [0, 10], sizes = [8, 1], strides = [1, 1]} : vector<8x18xf32> to vector<8x1xf32>
    %110 = vector.extract_strided_slice %5 {offsets = [10, 0], sizes = [1, 128], strides = [1, 1]} : vector<18x128xf32> to vector<1x128xf32>
    %111 = vector.broadcast %109 : vector<8x1xf32> to vector<8x128xf32>
    %112 = vector.broadcast %110 : vector<1x128xf32> to vector<8x128xf32>
    %113 = arith.subf %111, %112 : vector<8x128xf32>
    %114 = math.absf %113 : vector<8x128xf32>
    %115 = arith.addf %108, %114 : vector<8x128xf32>
    %116 = vector.extract_strided_slice %4 {offsets = [0, 11], sizes = [8, 1], strides = [1, 1]} : vector<8x18xf32> to vector<8x1xf32>
    %117 = vector.extract_strided_slice %5 {offsets = [11, 0], sizes = [1, 128], strides = [1, 1]} : vector<18x128xf32> to vector<1x128xf32>
    %118 = vector.broadcast %116 : vector<8x1xf32> to vector<8x128xf32>
    %119 = vector.broadcast %117 : vector<1x128xf32> to vector<8x128xf32>
    %120 = arith.subf %118, %119 : vector<8x128xf32>
    %121 = math.absf %120 : vector<8x128xf32>
    %122 = arith.addf %115, %121 : vector<8x128xf32>
    %123 = vector.extract_strided_slice %4 {offsets = [0, 12], sizes = [8, 1], strides = [1, 1]} : vector<8x18xf32> to vector<8x1xf32>
    %124 = vector.extract_strided_slice %5 {offsets = [12, 0], sizes = [1, 128], strides = [1, 1]} : vector<18x128xf32> to vector<1x128xf32>
    %125 = vector.broadcast %123 : vector<8x1xf32> to vector<8x128xf32>
    %126 = vector.broadcast %124 : vector<1x128xf32> to vector<8x128xf32>
    %127 = arith.subf %125, %126 : vector<8x128xf32>
    %128 = math.absf %127 : vector<8x128xf32>
    %129 = arith.addf %122, %128 : vector<8x128xf32>
    %130 = vector.extract_strided_slice %4 {offsets = [0, 15], sizes = [8, 1], strides = [1, 1]} : vector<8x18xf32> to vector<8x1xf32>
    %131 = vector.extract_strided_slice %5 {offsets = [15, 0], sizes = [1, 128], strides = [1, 1]} : vector<18x128xf32> to vector<1x128xf32>
    %132 = vector.broadcast %130 : vector<8x1xf32> to vector<8x128xf32>
    %133 = vector.broadcast %131 : vector<1x128xf32> to vector<8x128xf32>
    %134 = arith.minimumf %132, %133 : vector<8x128xf32>
    %135 = vector.extract_strided_slice %4 {offsets = [0, 13], sizes = [8, 1], strides = [1, 1]} : vector<8x18xf32> to vector<8x1xf32>
    %136 = vector.extract_strided_slice %5 {offsets = [13, 0], sizes = [1, 128], strides = [1, 1]} : vector<18x128xf32> to vector<1x128xf32>
    %137 = vector.broadcast %135 : vector<8x1xf32> to vector<8x128xf32>
    %138 = vector.broadcast %136 : vector<1x128xf32> to vector<8x128xf32>
    %139 = arith.maximumf %137, %138 : vector<8x128xf32>
    %140 = arith.subf %134, %139 : vector<8x128xf32>
    %cst_12 = arith.constant 0.000000e+00 : f32
    %141 = vector.broadcast %cst_12 : f32 to vector<8x128xf32>
    %142 = arith.maximumf %140, %141 : vector<8x128xf32>
    %143 = vector.extract_strided_slice %4 {offsets = [0, 16], sizes = [8, 1], strides = [1, 1]} : vector<8x18xf32> to vector<8x1xf32>
    %144 = vector.extract_strided_slice %5 {offsets = [16, 0], sizes = [1, 128], strides = [1, 1]} : vector<18x128xf32> to vector<1x128xf32>
    %145 = vector.broadcast %143 : vector<8x1xf32> to vector<8x128xf32>
    %146 = vector.broadcast %144 : vector<1x128xf32> to vector<8x128xf32>
    %147 = arith.minimumf %145, %146 : vector<8x128xf32>
    %148 = vector.extract_strided_slice %4 {offsets = [0, 14], sizes = [8, 1], strides = [1, 1]} : vector<8x18xf32> to vector<8x1xf32>
    %149 = vector.extract_strided_slice %5 {offsets = [14, 0], sizes = [1, 128], strides = [1, 1]} : vector<18x128xf32> to vector<1x128xf32>
    %150 = vector.broadcast %148 : vector<8x1xf32> to vector<8x128xf32>
    %151 = vector.broadcast %149 : vector<1x128xf32> to vector<8x128xf32>
    %152 = arith.maximumf %150, %151 : vector<8x128xf32>
    %153 = arith.subf %147, %152 : vector<8x128xf32>
    %cst_13 = arith.constant 0.000000e+00 : f32
    %154 = vector.broadcast %cst_13 : f32 to vector<8x128xf32>
    %155 = arith.maximumf %153, %154 : vector<8x128xf32>
    %156 = arith.mulf %142, %155 : vector<8x128xf32>
    %157 = vector.extract_strided_slice %4 {offsets = [0, 17], sizes = [8, 1], strides = [1, 1]} : vector<8x18xf32> to vector<8x1xf32>
    %158 = vector.extract_strided_slice %5 {offsets = [17, 0], sizes = [1, 128], strides = [1, 1]} : vector<18x128xf32> to vector<1x128xf32>
    %159 = vector.broadcast %157 : vector<8x1xf32> to vector<8x128xf32>
    %160 = vector.broadcast %158 : vector<1x128xf32> to vector<8x128xf32>
    %161 = arith.addf %159, %160 : vector<8x128xf32>
    %162 = arith.subf %161, %156 : vector<8x128xf32>
    %cst_14 = arith.constant 1.000000e-07 : f32
    %163 = vector.broadcast %cst_14 : f32 to vector<8x128xf32>
    %164 = arith.maximumf %162, %163 : vector<8x128xf32>
    %165 = tpu.reciprocal %164 {approx = true} : vector<8x128xf32> -> vector<8x128xf32>
    %166 = arith.mulf %156, %165 : vector<8x128xf32>
    %167 = vector.extract_strided_slice %4 {offsets = [0, 15], sizes = [8, 1], strides = [1, 1]} : vector<8x18xf32> to vector<8x1xf32>
    %168 = vector.extract_strided_slice %5 {offsets = [15, 0], sizes = [1, 128], strides = [1, 1]} : vector<18x128xf32> to vector<1x128xf32>
    %169 = vector.broadcast %167 : vector<8x1xf32> to vector<8x128xf32>
    %170 = vector.broadcast %168 : vector<1x128xf32> to vector<8x128xf32>
    %171 = arith.maximumf %169, %170 : vector<8x128xf32>
    %172 = vector.extract_strided_slice %4 {offsets = [0, 13], sizes = [8, 1], strides = [1, 1]} : vector<8x18xf32> to vector<8x1xf32>
    %173 = vector.extract_strided_slice %5 {offsets = [13, 0], sizes = [1, 128], strides = [1, 1]} : vector<18x128xf32> to vector<1x128xf32>
    %174 = vector.broadcast %172 : vector<8x1xf32> to vector<8x128xf32>
    %175 = vector.broadcast %173 : vector<1x128xf32> to vector<8x128xf32>
    %176 = arith.minimumf %174, %175 : vector<8x128xf32>
    %177 = arith.subf %171, %176 : vector<8x128xf32>
    %178 = vector.extract_strided_slice %4 {offsets = [0, 16], sizes = [8, 1], strides = [1, 1]} : vector<8x18xf32> to vector<8x1xf32>
    %179 = vector.extract_strided_slice %5 {offsets = [16, 0], sizes = [1, 128], strides = [1, 1]} : vector<18x128xf32> to vector<1x128xf32>
    %180 = vector.broadcast %178 : vector<8x1xf32> to vector<8x128xf32>
    %181 = vector.broadcast %179 : vector<1x128xf32> to vector<8x128xf32>
    %182 = arith.maximumf %180, %181 : vector<8x128xf32>
    %183 = vector.extract_strided_slice %4 {offsets = [0, 14], sizes = [8, 1], strides = [1, 1]} : vector<8x18xf32> to vector<8x1xf32>
    %184 = vector.extract_strided_slice %5 {offsets = [14, 0], sizes = [1, 128], strides = [1, 1]} : vector<18x128xf32> to vector<1x128xf32>
    %185 = vector.broadcast %183 : vector<8x1xf32> to vector<8x128xf32>
    %186 = vector.broadcast %184 : vector<1x128xf32> to vector<8x128xf32>
    %187 = arith.minimumf %185, %186 : vector<8x128xf32>
    %188 = arith.subf %182, %187 : vector<8x128xf32>
    %189 = arith.mulf %177, %188 : vector<8x128xf32>
    %190 = arith.subf %189, %162 : vector<8x128xf32>
    %cst_15 = arith.constant 1.000000e-07 : f32
    %191 = vector.broadcast %cst_15 : f32 to vector<8x128xf32>
    %192 = arith.maximumf %189, %191 : vector<8x128xf32>
    %193 = tpu.reciprocal %192 {approx = true} : vector<8x128xf32> -> vector<8x128xf32>
    %194 = arith.mulf %190, %193 : vector<8x128xf32>
    %195 = arith.subf %166, %194 : vector<8x128xf32>
    %cst_16 = arith.constant 5.000000e-01 : f32
    %196 = vector.broadcast %cst_16 : f32 to vector<8x128xf32>
    %197 = arith.mulf %196, %195 : vector<8x128xf32>
    %198 = arith.subf %129, %197 : vector<8x128xf32>
    %199 = arith.addf %102, %198 : vector<8x128xf32>
    %c0_17 = arith.constant 0 : index
    %c0_18 = arith.constant 0 : index
    %200 = vector.load %arg6[%c0_17, %c0_18] : memref<8x128xf32, #tpu.memory_space<vmem>>, vector<8x128xf32>
    tpu.vector_store %arg6[%c0_17, %c0_18], %199 {strides = array<i32>} : memref<8x128xf32, #tpu.memory_space<vmem>>, vector<8x128xf32>,
    return
  }
  func.func @transform_0(%arg0: i32, %arg1: i32) -> (i32, i32) {
    %c0_i32 = arith.constant 0 : i32
    %c0_i32_0 = arith.constant 0 : i32
    return %arg0, %c0_i32 : i32, i32
  }
  func.func @transform_1(%arg0: i32, %arg1: i32) -> (i32, i32) {
    %c0_i32 = arith.constant 0 : i32
    %c0_i32_0 = arith.constant 0 : i32
    return %arg0, %c0_i32 : i32, i32
  }
  func.func @transform_2(%arg0: i32, %arg1: i32) -> (i32, i32) {
    %c0_i32 = arith.constant 0 : i32
    %c0_i32_0 = arith.constant 0 : i32
    return %c0_i32, %arg1 : i32, i32
  }
  func.func @transform_3(%arg0: i32, %arg1: i32) -> (i32, i32) {
    %c0_i32 = arith.constant 0 : i32
    %c0_i32_0 = arith.constant 0 : i32
    return %c0_i32, %arg1 : i32, i32
  }
  func.func @transform_4(%arg0: i32, %arg1: i32) -> (i32, i32) {
    %c0_i32 = arith.constant 0 : i32
    return %arg0, %arg1 : i32, i32
  }
}

</mosaic_0001>

<bundles_post_ra>
// kernel: tpu_custom_call.1
= control target key start
LH: loop header
LB: loop body
LE: loop exit
PB: predicated region body
PF: predicated region fallthrough
CT: control target
= control target key end

     0   :  { %s1384_s0 = inlined_call_operand.hbm [shape: f32[16,128], index: 0, kind: input, shape index: {}]   ;;  %s1385_s1 = inlined_call_operand.hbm [shape: f32[16,18], index: 1, kind: input, shape index: {}]   ;;  %s1386_s2 = inlined_call_operand.hbm [shape: bf16[128,128], index: 2, kind: input, shape index: {}]   ;;  %s1387_s3 = inlined_call_operand.hbm [shape: f32[18,128], index: 3, kind: input, shape index: {}]   ;;  %s1388_s4 = inlined_call_operand.hbm [shape: f32[16,128], index: 4, kind: output, shape index: {}]  }
   0x1   :  { %1391 = sst [smem:[#allocation19_spill]] %s1386_s2 }
   0x2   :  { %1392 = sst [smem:[#allocation20_spill]] %s1387_s3 }
   0x3   :  { %9 = vsyncpa [#allocation3], 0 }
   0x4   :  { %11 = vsyncpa [#allocation3 + $0x1], 0 }
   0x5   :  { %12 = vsyncpa [#allocation6], 0 }
   0x6   :  { %14 = vsyncpa [#allocation6 + $0x1], 0 }
   0x7   :  { %15 = vsyncpa [#allocation9], 0 }
   0x8   :  { %16 = vsyncpa [#allocation4], 0 }
   0x9   :  { %18 = vsyncpa [#allocation4 + $0x1], 0  ;;  %s1172_s15 = smov 0   ;;  %s1174_s16 = smov 0  }
   0xa   :  { %s1176_s17 = smov 0   ;;  %s1178_s18 = smov 0  }
   0xb   :  { %s1180_s19 = smov 0   ;;  %s1182_s20 = smov 0  }
   0xc LB: > { %1393 = sst [smem:[#allocation16_spill]] %s1117_s19  ;;  %s1203_s21 = sadd.s32 4294967295, %s1121_s20   ;;  %s1121_s20 = sphi %s1182_s20, %s24_s20   ;;  %s1117_s19 = sphi %s1180_s19, %s1405_s19   ;;  %s1113_s18 = sphi %s1178_s18, %s1404_s18   ;;  %s1109_s17 = sphi %s1176_s17, %s1408_s17   ;;  %s1105_s16 = sphi %s1174_s16, %s1407_s16   ;;  %s1101_s15 = sphi %s1172_s15, %s1406_s15  }
   0xd   : > { %p713_p0 = scmp.ge.s32.totalorder %s1121_s20, 1  ;;  %p57_p1 = scmp.eq.s32.totalorder %s1203_s21, 0 }
   0xe   : > { %p173_p2 = scmp.lt.s32.totalorder %s1121_s20, 3  ;;  %s1394_s2 = sld [smem:[#allocation19_spill]] }
   0xf   : > { %s1123_s26 = smov [#allocation7]   ;;  %p716_p6 = scmp.ge.s32.totalorder %s1121_s20, 2 }
  0x10   : > { %p1211_p3 = pnand %p713_p0, %p173_p2  ;;  %s188_s27 = sshll.u32 %s1123_s26, 4  ;;  %s189_s27 = int_to_ptr.vmem [resolvable:$true] %s188_s27 }
  0x11   : > { %s1396_s3 = sld [smem:[#allocation20_spill]]  ;;  %s1124_s5 = smov 64  }
  0x12   : > { %p785_p4 = pneg %p1211_p3  ;;  %s1125_s6 = smov 4  }
  0x13   : > { %s1126_s7 = smov [#allocation8]   ;;  %s1127_s9 = smov 128  }
  0x14   : > { %s186_s24 = sshll.u32 %s1394_s2, 4  ;;  %p786_p5 = pnand %p785_p4, %p57_p1  ;;  %s187_s24 = int_to_ptr.hbm [resolvable:$true] %s186_s24 }
  0x15   : > { %s204_s8 = sshll.u32 %s1126_s7, 4  ;;  %s1128_s10 = smov 8   ;;  %s205_s8 = int_to_ptr.vmem [resolvable:$true] %s204_s8 }
  0x16   : > { %788 = dma.hbm_to_vmem [thread:$0]  (!%p786_p5), %s187_s24, 1024, %s189_s27, [#allocation6], %s1124_s5, %s1124_s5, %s1125_s6  }
  0x17   : > { %s202_s30 = sshll.u32 %s1396_s3, 4  ;;  %s712_s11 = sadd.s32 4294967294, %s1121_s20   ;;  %s203_s30 = int_to_ptr.hbm [resolvable:$true] %s202_s30 }
  0x18   : > { %791 = dma.hbm_to_vmem [thread:$0]  (!%p786_p5), %s203_s30, 384, %s205_s8, [#allocation9], %s1127_s9, %s1127_s9, %s1128_s10  }
  0x19   : > { %s36_s12 = sadd.s32 1, %s1117_s19  ;;  %s43_s13 = sadd.s32 1, %s1109_s17 }
  0x1a   : > { %p38_p7 = scmp.ge.s32.totalorder %s36_s12, 2  ;;  %p50_p8 = scmp.ne.s32.totalorder %s1109_s17, %s1105_s16 }
  0x1b   : > { %p51_p9 = scmp.eq.s32.totalorder %s1121_s20, 0  ;;  %p56_p11 = scmp.ne.s32.totalorder %s1105_s16, %s1101_s15 }
  0x1c   : > { %s1410_s12 = smov (%p38_p7, %s36_s12), 0  ;;  %p160_p12 = scmp.eq.s32.totalorder %s1203_s21, 1 }
  0x1d   : > { %1397 = sst [smem:[#allocation17_spill]] %s1410_s12  ;;  %p1231_p10 = por %p51_p9, %p50_p8 }
  0x1e   : > { %s40_s22 = ssub.s32 %s1117_s19, %s1410_s12  ;;  %p1242_p0 = por %p57_p1, %p56_p11 }
  0x1f   : > { %p41_p13 = scmp.eq.s32.totalorder %s40_s22, 0  ;;  %p1246_p2 = por %p160_p12, %p50_p8 }
  0x20   : > { %p166_p4 = scmp.eq.s32.totalorder %s712_s11, 1  ;;  %p805_p7 = scmp.lt.s32.totalorder %s1121_s20, 2 }
  0x21   : > { %s1251_s26 = scalar_select %p41_p13, %s1109_s17, %s43_s13  }
  0x22   : > { %p1253_p5 = por %p166_p4, %p56_p11  ;;  %s218_s28 = sand.u32 1, %s1109_s17  }
  0x23   : > { %1401 = sst [smem:[#allocation18_spill]] %s1251_s26  ;;  %s718_s29 = sshll.u32 %s1117_s19, 3 }
  0x24   : > { %s717_s30 = sshll.u32 %s218_s28, 3  ;;  %s226_s7 = scalar_lea.hbm %s1384_s0, %s718_s29 }
  0x25   : > { %s228_s8 = sshll.u32 %s226_s7, 4  ;;  %s222_s9 = scalar_lea.vmem [#allocation2], %s717_s30  ;;  %s229_s8 = int_to_ptr.hbm [resolvable:$true] %s228_s8 }
  0x26   : > { %s230_s10 = sshll.u32 %s222_s9, 4  ;;  %p793_p8 = pnand %p805_p7, %p1231_p10  ;;  %s231_s10 = int_to_ptr.vmem [resolvable:$true] %s230_s10 }
  0x27   : > { %s245_s22 = scalar_lea.hbm %s1385_s1, %s718_s29  ;;  %s237_s2 = sand.u32 1, %s1121_s20  }
  0x28   : > { %s219_s3 = scalar_lea.sflag [#allocation3], %s218_s28  ;;  %s247_s12 = sshll.u32 %s245_s22, 4  ;;  %s248_s12 = int_to_ptr.hbm [resolvable:$true] %s247_s12 }
  0x29   : > { %795 = dma.hbm_to_vmem [thread:$0]  (!%p793_p8), %s229_s8, 128, %s231_s10, %s219_s3  }
  0x2a   : > { %s241_s19 = scalar_lea.vmem [#allocation5], %s717_s30  ;;  %s238_s5 = scalar_lea.sflag [#allocation6], %s237_s2 }
  0x2b   : > { %s249_s26 = sshll.u32 %s241_s19, 4  ;;  %258 = sbr.rel (%p1211_p3) target bundleno = 242 (0xf2), region = 36  ;;  %s250_s26 = int_to_ptr.vmem [resolvable:$true] %s249_s26 }
  0x2c   : > { %798 = dma.hbm_to_vmem [thread:$0]  (!%p793_p8), %s248_s12, 128, %s250_s26, %s238_s5  }
  0x2d   : > { %s1272_s14 = sand.u32 (!%p1211_p3), 1, %s1105_s16  }
  0x2e   : > { %s1275_s29 = sshll.u32 (!%p1211_p3), %s1272_s14, 3  ;;  %s261_s3 = scalar_lea.sflag (!%p1211_p3), [#allocation3], %s1272_s14 }
  0x2f   : > { %s264_s28 = scalar_lea.vmem (!%p1211_p3), [#allocation2], %s1275_s29 }
  0x30   : > { %1080 = dma.done.wait (%p1242_p0), %s261_s3, 128  }
  0x31   : > { %1082 = vsyncadd (%p1242_p0), %s261_s3, 4294967168  ;;  %s270_s2 = sand.u32 1, %s1203_s21   ;;  %s274_s25 = scalar_lea.vmem [#allocation5], %s1275_s29 }
  0x32   : > { %s271_s19 = scalar_lea.sflag [#allocation6], %s270_s2 }
  0x33   : > { %1084 = dma.done.wait (%p1242_p0), %s271_s19, 128  }
  0x34   : > { %1086 = vsyncadd (%p1242_p0), %s271_s19, 4294967168 }
  0x35   : > { %1088 = dma.done.wait (%p57_p1), [#allocation6], 1024  }
  0x36   : > { %1090 = vsyncadd (%p57_p1), [#allocation6], 4294966272 }
  0x37   : > { %1092 = dma.done.wait (%p57_p1), [#allocation9], 384  }
  0x38   : > { %1094 = vsyncadd (%p57_p1), [#allocation9], 4294966912  ;;  %v1129_v0 = vmov 2   ;;  %v1130_v1 = vmov 0   ;;  %v1131_v2 = vmov 6   ;;  %v1297_v3 = vld [vmem:[%s274_s25] sm:$0xff] }
  0x39   : > { %883 = vset.pattern.permute.xlu1 %v1129_v0  ;;  %881 = vset.pattern.permute.xlu0 %v1130_v1  ;;  %v770_v4 = vld [vmem:[#allocation7 + $0x38] sm:$0xff]  ;;  %v769_v5 = vld [vmem:[#allocation7 + $0x30] sm:$0xff]  ;;  %v768_v6 = vld [vmem:[#allocation7 + $0x28] sm:$0xff]  ;;  %v1132_v7 = vmov 3   ;;  %v1133_v8 = vmov 1   ;;  %v1134_v10 = vmov 4  }
  0x3a   : > { %885 = vset.pattern.permute.xlu2 %v1131_v2  ;;  %354 = vperm.xlu1 %883, %v1297_v3   ;;  %v767_v9 = vld [vmem:[#allocation7 + $0x20] sm:$0xff]  ;;  %v766_v11 = vld [vmem:[#allocation7 + $0x18] sm:$0xff]  ;;  %v1135_v12 = vmov 7   ;;  %v1136_v13 = vmov 15   ;;  %v765_v14 = vld [vmem:[#allocation7 + $0x10] sm:$0xff]  ;;  %v1137_v15 = vmov 5  }
  0x3b   : > { %339 = vperm.xlu0 %881, %v1297_v3   ;;  %470 = vmatpush.bf16.msra.mxu0 %v770_v4  ;;  %v764_v16 = vld [vmem:[#allocation7 + $0x8] sm:$0xff]  ;;  %v1138_v17 = vmov 13   ;;  %v763_v18 = vld [vmem:[#allocation7] sm:$0xff]  ;;  %v1139_v20 = vmov 17   ;;  %v1140_v21 = vmov 16   ;;  %v1141_v23 = vmov 14  }
  0x3c   : > { %370 = vperm.xlu2 %885, %v1297_v3   ;;  %v315_v19 = vld [vmem:[%s264_s28] sm:$0xff]  ;;  %v1142_v24 = vmov 8   ;;  %v1143_v25 = vmov 9   ;;  %v1144_v26 = vmov 10   ;;  %v1145_v27 = vmov 11   ;;  %s760_s21 = sshll.u32 %s1113_s18, 3 }
  0x3d   : > { %v316_v22 = vpack.c.bf16 %v315_v19, %v315_v19  ;;  %v1146_v28 = vmov 12   ;;  %v1323_v34 = vld [vmem:[#allocation8] sm:$0xff]  ;;  %v1329_v46 = vld [vmem:[#allocation8 + $0x8] sm:$0xff]  ;;  %v336_v62 = vld [vmem:[#allocation8 + $0x10] sm:$0x3]  ;;  %s581_s26 = scalar_lea.hbm %s1388_s4, %s760_s21  ;;  %s314_s30 = scalar_lea.vmem [#allocation10], %s1275_s29 }
  0x3e   : > { %v373_v35 = vperm.slane %v1323_v34, 6  ;;  %v379_v36 = vperm.slane %v1323_v34, 4  ;;  %v393_v38 = vperm.slane %v1323_v34, 5  ;;  %v387_v40 = vperm.slane %v1323_v34, 7  ;;  %s583_s6 = sshll.u32 %s314_s30, 4  ;;  %s585_s7 = sshll.u32 %s581_s26, 4  ;;  %s584_s6 = int_to_ptr.vmem [resolvable:$true] %s583_s6  ;;  %s586_s7 = int_to_ptr.hbm [resolvable:$true] %s585_s7 }
  0x3f   : > { %471 = vmatpush.bf16.msra.mxu0 %v769_v5  ;;  %v402_v50 = vperm.slane %v1329_v46, 0  ;;  %v524_v63 = vperm.slane %v1329_v46, 5  ;;  %v518_v0 = vperm.slane %v1329_v46, 7  ;;  %v532_v4 = vperm.slane %v336_v62, 0  ;;  %s570_s18 = scalar_lea.sflag [#allocation4], %s1272_s14  ;;  %s1041_s8 = sshra.s32 %s586_s7, 4  ;;  %s1042_s8 = int_to_ptr.hbm [resolvable:$true] %s1041_s8 }
  0x40   : > { %s1043_s9 = scalar_lea.hbm %s1042_s8, 8  ;;  %s1047_s13 = scalar_lea.hbm %s1388_s4, 16 }
  0x41   : > { %p1044_p1 = scmp.ne.s32.totalorder %s1042_s8, %s1043_s9  ;;  %p1048_p10 = scmp.lt.s32.totalorder %s1042_s8, %s1388_s4 }
  0x42   : > { %884 = vset.pattern.permute.xlu1 %v1132_v7  ;;  %p1049_p11 = scmp.lt.s32.totalorder %s1047_s13, %s1043_s9 }
  0x43   : > { %882 = vset.pattern.permute.xlu0 %v1133_v8  ;;  %362 = vperm.xlu1 %884, %v1297_v3   ;;  %v538_v8 = vperm.slane %v1329_v46, 6  ;;  %p1045_p3 = pnand %p1044_p1, %p1246_p2 }
  0x44   : > { %346 = vperm.xlu0 %882, %v1297_v3   ;;  %472 = vmatpush.bf16.msra.mxu0 %v768_v6  ;;  %p1050_p12 = por %p1049_p11, %p1048_p10 }
  0x45   : > { %886 = vset.pattern.permute.xlu2 %v1134_v10  ;;  %v342_v10 = vperm.slane %v1323_v34, 0  ;;  %p1046_p9 = pneg %p1045_p3 }
  0x46   : > { %376 = vperm.xlu2 %886, %v1297_v3  }
  0x47   : > { %p1051_p13 = pnand %p1050_p12, %p1046_p9 }
  0x48   : > { %473 = vmatpush.bf16.msra.mxu0 %v767_v9 }
  0x4b   : > { %887 = vset.pattern.permute.xlu1 %v1135_v12 }
  0x4c   : > { %889 = vset.pattern.permute.xlu0 %v1136_v13  ;;  %384 = vperm.xlu1 %887, %v1297_v3   ;;  %v349_v13 = vperm.slane %v1323_v34, 1 }
  0x4d   : > { %474 = vmatpush.bf16.msra.mxu0 %v766_v11  ;;  %515 = vperm.xlu0 %889, %v1297_v3  }
  0x4e   : > { %888 = vset.pattern.permute.xlu2 %v1137_v15 }
  0x4f   : > { %390 = vperm.xlu2 %888, %v1297_v3  }
  0x51   : > { %475 = vmatpush.bf16.msra.mxu0 %v765_v14 }
  0x54   : > { %890 = vset.pattern.permute.xlu1 %v1138_v17 }
  0x55   : > { %476 = vmatpush.bf16.msra.mxu0 %v764_v16  ;;  %521 = vperm.xlu1 %890, %v1297_v3  }
  0x56   : > { %894 = vset.pattern.permute.xlu0 %v1139_v20 }
  0x57   : > { %891 = vset.pattern.permute.xlu2 %v1140_v21  ;;  %544 = vperm.xlu0 %894, %v1297_v3   ;;  %v547_v21 = vperm.slane %v336_v62, 1 }
  0x58   : > { %529 = vperm.xlu2 %891, %v1297_v3  }
  0x59   : > { %477 = vmatpush.bf16.msra.mxu0 %v763_v18 }
  0x5c   : > { %478 = vmatmul.bf16.vlgmr.msra.gmra.mxu0 %v316_v22 }
  0x5d   : > { %892 = vset.pattern.permute.xlu1 %v1141_v23 }
  0x5e   : > { %535 = vperm.xlu1 %892, %v1297_v3  }
  0x60   : > { %893 = vset.pattern.permute.xlu2 %v1142_v24 }
  0x61   : > { %399 = vperm.xlu2 %893, %v1297_v3  }
  0x66   : > { %895 = vset.pattern.permute.xlu1 %v1143_v25 }
  0x67   : > { %484 = vperm.xlu1 %895, %v1297_v3  }
  0x69   : > { %896 = vset.pattern.permute.xlu2 %v1144_v26 }
  0x6a   : > { %491 = vperm.xlu2 %896, %v1297_v3  }
  0x6f   : > { %897 = vset.pattern.permute.xlu1 %v1145_v27 }
  0x70   : > { %499 = vperm.xlu1 %897, %v1297_v3  }
  0x72   : > { %898 = vset.pattern.permute.xlu2 %v1146_v28 }
  0x73   : > { %507 = vperm.xlu2 %898, %v1297_v3  }
  0x96   : > { %v371_v29 = vpop.permute.xlu2 %370 }
  0x97   : > { %v374_v41 = vmin.f32 %v371_v29, %v373_v35  ;;  %v408_v56 = vmax.f32 %v371_v29, %v373_v35  ;;  %v357_v35 = vperm.slane %v1323_v34, 2 }
  0xa0   : > { %v377_v30 = vpop.permute.xlu2 %376 }
  0xa1   : > { %v380_v42 = vmax.f32 %v377_v30, %v379_v36  ;;  %v409_v57 = vmin.f32 %v377_v30, %v379_v36 }
  0xa3   : > { %v381_v47 = vsub.f32 %v374_v41, %v380_v42  ;;  %v410_v1 = vsub.f32 %v408_v56, %v409_v57 }
  0xa5   : > { %v382_v53 = vmax.f32 %v381_v47, 0.0 }
  0xa9   : > { %v391_v32 = vpop.permute.xlu2 %390 }
  0xaa   : > { %v394_v43 = vmax.f32 %v391_v32, %v393_v38  ;;  %v412_v54 = vmin.f32 %v391_v32, %v393_v38 }
  0xac   : > { %v1319_v31 = vpop.permute.xlu1 %354 }
  0xad   : > { %v340_v37 = vpop.permute.xlu0 %339 }
  0xae   : > { %v343_v26 = vsub.f32 %v340_v37, %v342_v10  ;;  %v487_v37 = vperm.slane %v1329_v46, 1 }
  0xb0   : > { %v344_v41 = vand.u32 2147483647, %v343_v26 }
  0xb2   : > { %v530_v39 = vpop.permute.xlu2 %529 }
  0xb3   : > { %v533_v14 = vmin.f32 %v530_v39, %v532_v4  ;;  %v556_v15 = vmax.f32 %v530_v39, %v532_v4 }
  0xb5   : > { %v1321_v33 = vpop.permute.xlu1 %362 }
  0xb6   : > { %v347_v49 = vpop.permute.xlu0 %346 }
  0xb7   : > { %v350_v27 = vsub.f32 %v347_v49, %v349_v13  ;;  %v358_v49 = vsub.f32 %v1319_v31, %v357_v35  ;;  %v502_v31 = vperm.slane %v1329_v46, 3 }
  0xb9   : > { %v351_v42 = vand.u32 2147483647, %v350_v27 }
  0xbb   : > { %v400_v52 = vpop.permute.xlu2 %399 }
  0xbc   : > { %v403_v59 = vadd.f32 %v402_v50, %v400_v52  ;;  %v365_v50 = vperm.slane %v1323_v34, 3 }
  0xbe   : > { %v385_v44 = vpop.permute.xlu1 %384  ;;  %v366_v62 = vsub.f32 %v1321_v33, %v365_v50 }
  0xbf   : > { %v388_v45 = vmin.f32 %v385_v44, %v387_v40  ;;  %v411_v55 = vmax.f32 %v385_v44, %v387_v40  ;;  %v516_v3 = vpop.permute.xlu0 %515 }
  0xc0   : > { %v519_v7 = vmin.f32 %v516_v3, %v518_v0  ;;  %v553_v12 = vmax.f32 %v516_v3, %v518_v0 }
  0xc1   : > { %v395_v48 = vsub.f32 %v388_v45, %v394_v43  ;;  %v413_v61 = vsub.f32 %v411_v55, %v412_v54  ;;  %v494_v45 = vperm.slane %v1329_v46, 2  ;;  %v352_v54 = vadd.f32 %v351_v42, %v344_v41 }
  0xc2   : > { %v510_v55 = vperm.slane %v1329_v46, 4 }
  0xc3   : > { %v396_v51 = vmax.f32 %v395_v48, 0.0  ;;  %v414_v5 = vmul.f32 %v413_v61, %v410_v1  ;;  %v359_v61 = vand.u32 2147483647, %v358_v49 }
  0xc4   : > { %v492_v36 = vpop.permute.xlu2 %491 }
  0xc5   : > { %v397_v58 = vmul.f32 %v396_v51, %v382_v53  ;;  %v416_v16 = vmax.f32 %v414_v5, 1e-07  ;;  %v495_v57 = vsub.f32 %v492_v36, %v494_v45  ;;  %v360_v0 = vadd.f32 %v359_v61, %v352_v54 }
  0xc7   : > { %v522_v60 = vpop.permute.xlu1 %521  ;;  %v404_v2 = vsub.f32 %v403_v59, %v397_v58  ;;  %v496_v1 = vand.u32 2147483647, %v495_v57 }
  0xc8   : > { %v525_v6 = vmax.f32 %v522_v60, %v524_v63  ;;  %v554_v11 = vmin.f32 %v522_v60, %v524_v63 }
  0xc9   : > { %v405_v9 = vmax.f32 %v404_v2, 1e-07  ;;  %v545_v22 = vpop.permute.xlu0 %544  ;;  %v415_v52 = vsub.f32 %v414_v5, %v404_v2 }
  0xca   : > { %v526_v18 = vsub.f32 %v519_v7, %v525_v6  ;;  %v555_v23 = vsub.f32 %v553_v12, %v554_v11  ;;  %v548_v32 = vadd.f32 %v547_v21, %v545_v22  ;;  %v367_v7 = vand.u32 2147483647, %v366_v62 }
  0xcb   : > { %899 = vrcp.f32 %v405_v9 }
  0xcc   : > { %901 = vrcp.f32 %v416_v16  ;;  %v527_v28 = vmax.f32 %v526_v18, 0.0  ;;  %v368_v12 = vadd.f32 %v367_v7, %v360_v0 }
  0xcd   : > { %v508_v60 = vpop.permute.xlu2 %507 }
  0xce   : > { %v511_v3 = vsub.f32 %v508_v60, %v510_v55 }
  0xd0   : > { %v536_v17 = vpop.permute.xlu1 %535  ;;  %v512_v46 = vand.u32 2147483647, %v511_v3 }
  0xd1   : > { %v539_v19 = vmax.f32 %v536_v17, %v538_v8  ;;  %v557_v20 = vmin.f32 %v536_v17, %v538_v8  ;;  %v900_v40 = vpop.eup %899 }
  0xd2   : > { %v902_v48 = vpop.eup %901  ;;  %v407_v51 = vmul.f32 %v900_v40, %v397_v58 }
  0xd3   : > { %v540_v24 = vsub.f32 %v533_v14, %v539_v19  ;;  %v558_v25 = vsub.f32 %v556_v15, %v557_v20  ;;  %v418_v56 = vmul.f32 %v902_v48, %v415_v52 }
  0xd5   : > { %v541_v29 = vmax.f32 %v540_v24, 0.0  ;;  %v559_v30 = vmul.f32 %v558_v25, %v555_v23  ;;  %v419_v63 = vsub.f32 %v407_v51, %v418_v56 }
  0xd7   : > { %v561_v38 = vmax.f32 %v559_v30, 1e-07  ;;  %v542_v39 = vmul.f32 %v541_v29, %v527_v28  ;;  %v420_v8 = vmul.f32 0.5, %v419_v63 }
  0xd9   : > { %v479_v43 = vpop.f32.mrf.mxu0  ;;  %v549_v44 = vsub.f32 %v548_v32, %v542_v39  ;;  %v485_v47 = vpop.permute.xlu1 %484  ;;  %903 = vrcp.f32 %v561_v38  ;;  %v421_v15 = vsub.f32 %v368_v12, %v420_v8 }
  0xda   : > { %v488_v59 = vsub.f32 %v485_v47, %v487_v37 }
  0xdb   : > { %v550_v53 = vmax.f32 %v549_v44, 1e-07  ;;  %v560_v4 = vsub.f32 %v559_v30, %v549_v44  ;;  %v480_v19 = vadd.f32 %v479_v43, %v421_v15 }
  0xdc   : > { %v489_v2 = vand.u32 2147483647, %v488_v59 }
  0xdd   : > { %905 = vrcp.f32 %v550_v53 }
  0xde   : > { %v497_v33 = vadd.f32 %v496_v1, %v489_v2 }
  0xdf   : > { %v904_v58 = vpop.eup %903 }
  0xe0   : > { %v563_v11 = vmul.f32 %v904_v58, %v560_v4 }
  0xe1   : > { %v481_v34 = vpop.f32.mrf.mxu0 }
  0xe2   : > { %v500_v5 = vpop.permute.xlu1 %499 }
  0xe3   : > { %v906_v6 = vpop.eup %905  ;;  %v503_v9 = vsub.f32 %v500_v5, %v502_v31 }
  0xe4   : > { %v552_v10 = vmul.f32 %v906_v6, %v542_v39 }
  0xe5   : > { %v504_v13 = vand.u32 2147483647, %v503_v9 }
  0xe6   : > { %v564_v14 = vsub.f32 %v552_v10, %v563_v11 }
  0xe7   : > { %v505_v16 = vadd.f32 %v504_v13, %v497_v33 }
  0xe8   : > { %v565_v17 = vmul.f32 0.5, %v564_v14 }
  0xe9   : > { %v513_v18 = vadd.f32 %v512_v46, %v505_v16 }
  0xeb   : > { %v566_v20 = vsub.f32 %v513_v18, %v565_v17 }
  0xed   : > { %v567_v21 = vadd.f32 %v566_v20, %v480_v19 }
  0xef   : > { %568 = vst [vmem:[%s314_s30] sm:$0xff] %v567_v21 }
  0xf0   : > { %1054 = shalt.err (!%p1051_p13)
}
  0xf1   : > { %783 = dma.vmem_to_hbm [thread:$0]  (%p1246_p2), %s584_s6, 128, %s586_s7, %s570_s18  }
  0xf2 PF: > { %s597_s14 = sand.u32 1, %s1101_s15   ;;  %p800_p0 = pnand %p716_p6, %p1253_p5 }
  0xf3   : > { %s598_s29 = scalar_lea.sflag [#allocation4], %s597_s14 }
  0xf4   : > { %p801_p4 = pneg %p800_p0 }
  0xf6   : > { %1096 = dma.done.wait (%p801_p4), %s598_s29, 128  }
  0xf7   : > { %1098 = vsyncadd (%p801_p4), %s598_s29, 4294967168  ;;  %s24_s20 = sadd.s32 1, %s1121_s20   ;;  %s1403_s3 = sld [smem:[#allocation18_spill]] }
  0xf8   : > { %p21_p7 = scmp.ge.s32.totalorder %s24_s20, 4   ;;  %s1404_s18 = sld [smem:[#allocation16_spill]] }
  0xf9   : > { %s1405_s19 = sld [smem:[#allocation17_spill]]  ;;  %s1406_s15 = smov %s1105_s16 }
  0xfa   : > { %s1407_s16 = smov %s1109_s17  ;;  %23 = sbr.rel (!%p21_p7) target bundleno = 12 (0xc), region = 104 }
  0xfd   : > { %s1408_s17 = smov %s1403_s3 }
  0xff   :  { %604 = vsyncpa [#allocation3], 1 }
 0x100   :  { %606 = vsyncpa [#allocation3 + $0x1], 1 }
 0x101   :  { %607 = vsyncpa [#allocation6], 1 }
 0x102   :  { %609 = vsyncpa [#allocation6 + $0x1], 1 }
 0x103   :  { %610 = vsyncpa [#allocation9], 1 }
 0x104   :  { %611 = vsyncpa [#allocation4], 1 }
 0x105   :  { %613 = vsyncpa [#allocation4 + $0x1], 1 }

</bundles_post_ra>
